<compile_context>
chip_gen: v7x
topology: tpu7x:2x2x1
jax: 0.10.0
libtpu: 0.0.40
codegen_flags: <defaults>
</compile_context>

<pallas_src>
import functools

import jax
import jax.numpy as jnp
from jax.experimental import pallas as pl
from jax.experimental.pallas import tpu as pltpu


HID1 = 128   # fused layer-1 width: actor 64 + critic 64
HID2 = 128   # fused layer-2 width: actor 32 + critic 32, zero-padded to 128 lanes


def _round_up(x, m):
    return (x + m - 1) // m * m


def _choose_tile_b(B):
    """Single tile for small batches; otherwise the largest of 512/256/128
    that minimizes batch padding (grid >= 2 -> megacore sharding)."""
    b8 = _round_up(B, 8)
    if b8 <= 512:
        return b8
    best_tile, best_pad = 512, None
    for t in (512, 256, 128):
        pad = _round_up(B, t) - B
        if best_pad is None or pad < best_pad:
            best_tile, best_pad = t, pad
    return best_tile


def ppo_fused_kernel(x_ref, w1_ref, b1_ref, w2_ref, b2_ref, w3_ref, b3_ref,
                     out_ref, *, out_size):
    x = x_ref[...]

    # layer 1: actor & critic fused along lanes -> (TB, 128)
    h1 = jnp.tanh(jnp.dot(x, w1_ref[...], preferred_element_type=jnp.float32)
                  + b1_ref[...])
    # layer 2: block-diagonal packed -> (TB, 128); lanes [64:128] are exactly 0
    h2 = jnp.tanh(jnp.dot(h1, w2_ref[...], preferred_element_type=jnp.float32)
                  + b2_ref[...])
    # layer 3: block-diagonal packed, lane-dense (TB, OUT_PAD)
    z = (jnp.dot(h2, w3_ref[...], preferred_element_type=jnp.float32)
         + b3_ref[...])

    lane = jax.lax.broadcasted_iota(jnp.int32, z.shape, 1)
    actor_mask = lane < out_size          # lanes holding actor logits
    value_mask = lane == out_size         # lane holding the critic value

    # masked softmax over the actor lanes only (padded lanes contribute 0)
    logits = jnp.where(actor_mask, z, -jnp.inf)
    m = jnp.max(logits, axis=-1, keepdims=True)
    e = jnp.where(actor_mask, jnp.exp(z - m), 0.0)
    denom = jnp.sum(e, axis=-1, keepdims=True)
    # exact reciprocal: keeps sum(probs)==1 within 1e-5 (approx=True would not)
    probs = e * pl.reciprocal(denom, approx=False)

    # probs is exactly 0 outside the actor lanes, so a single select drops the
    # critic value into its lane and leaves the padding lanes at 0.
    out_ref[...] = (probs + jnp.where(value_mask, z, 0.0)).astype(out_ref.dtype)


def ppo_forward(x, packed, out_size, *, tile_b=None):
    """x: (B, input_size) f32.  packed: fused/padded params from pack_params."""
    B, in_size = x.shape
    out_pad = packed["w3"].shape[1]

    if tile_b is None:
        tile_b = _choose_tile_b(B)
    b_pad = _round_up(B, tile_b)
    if b_pad != B:
        x = jnp.pad(x, ((0, b_pad - B), (0, 0)))

    grid = (b_pad // tile_b,)
    kernel = functools.partial(ppo_fused_kernel, out_size=out_size)

    flops = 2 * b_pad * (in_size * HID1 + HID1 * HID2 + HID2 * out_pad)
    transcendentals = b_pad * (HID1 + HID2 + out_size)
    bytes_accessed = 4 * (b_pad * in_size + b_pad * out_pad
                          + in_size * HID1 + HID1
                          + HID1 * HID2 + HID2
                          + HID2 * out_pad + out_pad)

    out = pl.pallas_call(
        kernel,
        out_shape=jax.ShapeDtypeStruct((b_pad, out_pad), jnp.float32),
        grid_spec=pltpu.PrefetchScalarGridSpec(
            num_scalar_prefetch=0,
            grid=grid,
            in_specs=[
                pl.BlockSpec((tile_b, in_size), lambda i: (i, 0)),   # x tile
                pl.BlockSpec((in_size, HID1), lambda i: (0, 0)),     # W1 (resident)
                pl.BlockSpec((1, HID1), lambda i: (0, 0)),           # b1
                pl.BlockSpec((HID1, HID2), lambda i: (0, 0)),        # W2
                pl.BlockSpec((1, HID2), lambda i: (0, 0)),           # b2
                pl.BlockSpec((HID2, out_pad), lambda i: (0, 0)),     # W3
                pl.BlockSpec((1, out_pad), lambda i: (0, 0)),        # b3
            ],
            out_specs=pl.BlockSpec((tile_b, out_pad), lambda i: (i, 0)),
        ),
        compiler_params=pltpu.CompilerParams(
            dimension_semantics=("parallel",)),   # 2-TC sharding on v7x
        cost_estimate=pl.CostEstimate(
            flops=flops,
            transcendentals=transcendentals,
            bytes_accessed=bytes_accessed),
    )(x, packed["w1"], packed["b1"], packed["w2"], packed["b2"],
      packed["w3"], packed["b3"])

    probs = out[:B, :out_size]
    value = out[:B, out_size:out_size + 1]
    return probs, value


def init_params(key, input_size, output_size):
    """Deterministic init mimicking nn.Linear's U(-1/sqrt(fan_in), 1/sqrt(fan_in)).
    Weights are stored transposed: (in_features, out_features)."""
    def linear(k, fan_in, fan_out):
        kw, kb = jax.random.split(k)
        bound = 1.0 / jnp.sqrt(fan_in)
        w = jax.random.uniform(kw, (fan_in, fan_out), jnp.float32, -bound, bound)
        b = jax.random.uniform(kb, (1, fan_out), jnp.float32, -bound, bound)
        return w, b

    keys = jax.random.split(key, 6)
    p = {}
    p["w1a"], p["b1a"] = linear(keys[0], input_size, 64)
    p["w2a"], p["b2a"] = linear(keys[1], 64, 32)
    p["w3a"], p["b3a"] = linear(keys[2], 32, output_size)
    p["w1c"], p["b1c"] = linear(keys[3], input_size, 64)
    p["w2c"], p["b2c"] = linear(keys[4], 64, 32)
    p["w3c"], p["b3c"] = linear(keys[5], 32, 1)
    return p


def pack_params(p, out_size):
    """Fuse actor+critic weights: layer-1 lane-concat, layers 2/3 block-diagonal,
    final layer zero-padded to a lane-dense multiple of 128."""
    out_pad = _round_up(out_size + 1, 128)

    # layer 1: (in, 64) ++ (in, 64) -> (in, 128)
    w1 = jnp.concatenate([p["w1a"], p["w1c"]], axis=1)
    b1 = jnp.concatenate([p["b1a"], p["b1c"]], axis=1)

    # layer 2: blockdiag((64,32),(64,32)) -> (128, 64), padded to (128, 128)
    w2 = jnp.zeros((HID1, HID2), jnp.float32)
    w2 = w2.at[:64, :32].set(p["w2a"]).at[64:128, 32:64].set(p["w2c"])
    b2 = jnp.zeros((1, HID2), jnp.float32)
    b2 = b2.at[:, :32].set(p["b2a"]).at[:, 32:64].set(p["b2c"])

    # layer 3: blockdiag((32,out),(32,1)) -> (64, out+1), padded to (128, out_pad)
    w3 = jnp.zeros((HID2, out_pad), jnp.float32)
    w3 = w3.at[:32, :out_size].set(p["w3a"])
    w3 = w3.at[32:64, out_size:out_size + 1].set(p["w3c"])
    b3 = jnp.zeros((1, out_pad), jnp.float32)
    b3 = b3.at[:, :out_size].set(p["b3a"])
    b3 = b3.at[:, out_size:out_size + 1].set(p["b3c"])

    return {"w1": w1, "b1": b1, "w2": w2, "b2": b2, "w3": w3, "b3": b3}


def ppo_reference(x, p):
    """Pure-JAX reference of the PyTorch forward (un-fused params)."""
    h = jnp.tanh(x @ p["w1a"] + p["b1a"])
    h = jnp.tanh(h @ p["w2a"] + p["b2a"])
    probs = jax.nn.softmax(h @ p["w3a"] + p["b3a"], axis=-1)
    c = jnp.tanh(x @ p["w1c"] + p["b1c"])
    c = jnp.tanh(c @ p["w2c"] + p["b2c"])
    value = c @ p["w3c"] + p["b3c"]
    return probs, value


if __name__ == "__main__":
    B, INPUT_SIZE, OUTPUT_SIZE = 8, 32, 4

    key = jax.random.PRNGKey(0)
    kx, kp = jax.random.split(key)
    x = jax.random.normal(kx, (B, INPUT_SIZE), jnp.float32)
    params = init_params(kp, INPUT_SIZE, OUTPUT_SIZE)
    packed = pack_params(params, OUTPUT_SIZE)

    probs, value = ppo_forward(x, packed, OUTPUT_SIZE)
    probs = jax.block_until_ready(probs)
    value = jax.block_until_ready(value)

    ref_probs, ref_value = ppo_reference(x, params)
    assert probs.shape == (B, OUTPUT_SIZE) and value.shape == (B, 1)
    assert jnp.allclose(probs, ref_probs, atol=1e-5, rtol=1e-5)
    assert jnp.allclose(value, ref_value, atol=1e-5, rtol=1e-5)
    assert jnp.allclose(jnp.sum(probs, axis=-1), 1.0, atol=1e-5)

    # TODO(synk): switch weights/x to bf16 (f32 accumulation) once batch is large
    # enough to be MXU-bound; kept f32 here to hold the 1e-5 parity assertions.

    print("KERNEL_OK")
</pallas_src>

<mosaic_0001>
module attributes {stable_mosaic.version = 11 : i64} {
  func.func @ppo_fused_kernel(%arg0: i32, %arg1: memref<8x32xf32, #tpu.memory_space<vmem>>, %arg2: memref<32x128xf32, #tpu.memory_space<vmem>>, %arg3: memref<1x128xf32, #tpu.memory_space<vmem>>, %arg4: memref<128x128xf32, #tpu.memory_space<vmem>>, %arg5: memref<1x128xf32, #tpu.memory_space<vmem>>, %arg6: memref<128x128xf32, #tpu.memory_space<vmem>>, %arg7: memref<1x128xf32, #tpu.memory_space<vmem>>, %arg8: memref<8x128xf32, #tpu.memory_space<vmem>>) attributes {dimension_semantics = [#tpu.dimension_semantics<parallel>], iteration_bounds = array<i64: 1>, scalar_prefetch = 0 : i64, scratch_operands = 0 : i64, tpu.core_type = #tpu.core_type<tc>, window_params = [{transform_indices = @transform_0, window_bounds = array<i64: 8, 32>}, {pipeline_mode = #tpu.pipeline_mode<synchronous>, transform_indices = @transform_1, window_bounds = array<i64: 32, 128>}, {pipeline_mode = #tpu.pipeline_mode<synchronous>, transform_indices = @transform_2, window_bounds = array<i64: 1, 128>}, {pipeline_mode = #tpu.pipeline_mode<synchronous>, transform_indices = @transform_3, window_bounds = array<i64: 128, 128>}, {pipeline_mode = #tpu.pipeline_mode<synchronous>, transform_indices = @transform_4, window_bounds = array<i64: 1, 128>}, {pipeline_mode = #tpu.pipeline_mode<synchronous>, transform_indices = @transform_5, window_bounds = array<i64: 128, 128>}, {pipeline_mode = #tpu.pipeline_mode<synchronous>, transform_indices = @transform_6, window_bounds = array<i64: 1, 128>}, {transform_indices = @transform_7, window_bounds = array<i64: 8, 128>}]} {
    %c0 = arith.constant 0 : index
    %c0_0 = arith.constant 0 : index
    %0 = vector.load %arg1[%c0, %c0_0] : memref<8x32xf32, #tpu.memory_space<vmem>>, vector<8x32xf32>
    %c0_1 = arith.constant 0 : index
    %c0_2 = arith.constant 0 : index
    %1 = vector.load %arg2[%c0_1, %c0_2] : memref<32x128xf32, #tpu.memory_space<vmem>>, vector<32x128xf32>
    %cst = arith.constant dense<0.000000e+00> : vector<8x128xf32>
    %2 = tpu.matmul %0, %1, %cst {dimension_numbers = #tpu.dot_dimension_numbers<[1], [0], [0], [1], [0, 0, 1, 1], [], []>} : vector<8x32xf32>, vector<32x128xf32>, vector<8x128xf32> -> vector<8x128xf32>
    %c0_3 = arith.constant 0 : index
    %c0_4 = arith.constant 0 : index
    %3 = vector.load %arg3[%c0_3, %c0_4] : memref<1x128xf32, #tpu.memory_space<vmem>>, vector<1x128xf32>
    %4 = vector.broadcast %3 : vector<1x128xf32> to vector<8x128xf32>
    %5 = arith.addf %2, %4 : vector<8x128xf32>
    %6 = math.tanh %5 : vector<8x128xf32>
    %c0_5 = arith.constant 0 : index
    %c0_6 = arith.constant 0 : index
    %7 = vector.load %arg4[%c0_5, %c0_6] : memref<128x128xf32, #tpu.memory_space<vmem>>, vector<128x128xf32>
    %cst_7 = arith.constant dense<0.000000e+00> : vector<8x128xf32>
    %8 = tpu.matmul %6, %7, %cst_7 {dimension_numbers = #tpu.dot_dimension_numbers<[1], [0], [0], [1], [0, 0, 1, 1], [], []>} : vector<8x128xf32>, vector<128x128xf32>, vector<8x128xf32> -> vector<8x128xf32>
    %c0_8 = arith.constant 0 : index
    %c0_9 = arith.constant 0 : index
    %9 = vector.load %arg5[%c0_8, %c0_9] : memref<1x128xf32, #tpu.memory_space<vmem>>, vector<1x128xf32>
    %10 = vector.broadcast %9 : vector<1x128xf32> to vector<8x128xf32>
    %11 = arith.addf %8, %10 : vector<8x128xf32>
    %12 = math.tanh %11 : vector<8x128xf32>
    %c0_10 = arith.constant 0 : index
    %c0_11 = arith.constant 0 : index
    %13 = vector.load %arg6[%c0_10, %c0_11] : memref<128x128xf32, #tpu.memory_space<vmem>>, vector<128x128xf32>
    %cst_12 = arith.constant dense<0.000000e+00> : vector<8x128xf32>
    %14 = tpu.matmul %12, %13, %cst_12 {dimension_numbers = #tpu.dot_dimension_numbers<[1], [0], [0], [1], [0, 0, 1, 1], [], []>} : vector<8x128xf32>, vector<128x128xf32>, vector<8x128xf32> -> vector<8x128xf32>
    %c0_13 = arith.constant 0 : index
    %c0_14 = arith.constant 0 : index
    %15 = vector.load %arg7[%c0_13, %c0_14] : memref<1x128xf32, #tpu.memory_space<vmem>>, vector<1x128xf32>
    %16 = vector.broadcast %15 : vector<1x128xf32> to vector<8x128xf32>
    %17 = arith.addf %14, %16 : vector<8x128xf32>
    %18 = tpu.iota {dimensions = array<i32: 1>} : vector<8x128xi32>
    %c4_i32 = arith.constant 4 : i32
    %19 = vector.broadcast %c4_i32 : i32 to vector<8x128xi32>
    %20 = arith.cmpi slt, %18, %19 : vector<8x128xi32>
    %c4_i32_15 = arith.constant 4 : i32
    %21 = vector.broadcast %c4_i32_15 : i32 to vector<8x128xi32>
    %22 = arith.cmpi eq, %18, %21 : vector<8x128xi32>
    %cst_16 = arith.constant 0xFF800000 : f32
    %23 = vector.broadcast %cst_16 : f32 to vector<8x128xf32>
    %24 = arith.select %20, %17, %23 : vector<8x128xi1>, vector<8x128xf32>
    %cst_17 = arith.constant dense<0xFF800000> : vector<8xf32>
    %25 = vector.multi_reduction <maximumf>, %24, %cst_17 [1] : vector<8x128xf32> to vector<8xf32>
    %26 = vector.shape_cast %25 : vector<8xf32> to vector<8x1xf32>
    %27 = vector.broadcast %26 : vector<8x1xf32> to vector<8x128xf32>
    %28 = arith.subf %17, %27 : vector<8x128xf32>
    %29 = math.exp %28 : vector<8x128xf32>
    %cst_18 = arith.constant 0.000000e+00 : f32
    %30 = vector.broadcast %cst_18 : f32 to vector<8x128xf32>
    %31 = arith.select %20, %29, %30 : vector<8x128xi1>, vector<8x128xf32>
    %cst_19 = arith.constant dense<0.000000e+00> : vector<8xf32>
    %32 = vector.multi_reduction <add>, %31, %cst_19 [1] : vector<8x128xf32> to vector<8xf32>
    %33 = vector.shape_cast %32 : vector<8xf32> to vector<8x1xf32>
    %34 = tpu.reciprocal %33 : vector<8x1xf32> -> vector<8x1xf32>
    %35 = vector.broadcast %34 : vector<8x1xf32> to vector<8x128xf32>
    %36 = arith.mulf %31, %35 : vector<8x128xf32>
    %cst_20 = arith.constant 0.000000e+00 : f32
    %37 = vector.broadcast %cst_20 : f32 to vector<8x128xf32>
    %38 = arith.select %22, %17, %37 : vector<8x128xi1>, vector<8x128xf32>
    %39 = arith.addf %36, %38 : vector<8x128xf32>
    %c0_21 = arith.constant 0 : index
    %c0_22 = arith.constant 0 : index
    %40 = vector.load %arg8[%c0_21, %c0_22] : memref<8x128xf32, #tpu.memory_space<vmem>>, vector<8x128xf32>
    tpu.vector_store %arg8[%c0_21, %c0_22], %39 {strides = array<i32>} : memref<8x128xf32, #tpu.memory_space<vmem>>, vector<8x128xf32>,
    return
  }
  func.func @transform_0(%arg0: i32) -> (i32, i32) {
    %c0_i32 = arith.constant 0 : i32
    %c0_i32_0 = arith.constant 0 : i32
    return %arg0, %c0_i32 : i32, i32
  }
  func.func @transform_1(%arg0: i32) -> (i32, i32) {
    %c0_i32 = arith.constant 0 : i32
    %c0_i32_0 = arith.constant 0 : i32
    %c0_i32_1 = arith.constant 0 : i32
    return %c0_i32, %c0_i32_0 : i32, i32
  }
  func.func @transform_2(%arg0: i32) -> (i32, i32) {
    %c0_i32 = arith.constant 0 : i32
    %c0_i32_0 = arith.constant 0 : i32
    %c0_i32_1 = arith.constant 0 : i32
    return %c0_i32, %c0_i32_0 : i32, i32
  }
  func.func @transform_3(%arg0: i32) -> (i32, i32) {
    %c0_i32 = arith.constant 0 : i32
    %c0_i32_0 = arith.constant 0 : i32
    %c0_i32_1 = arith.constant 0 : i32
    return %c0_i32, %c0_i32_0 : i32, i32
  }
  func.func @transform_4(%arg0: i32) -> (i32, i32) {
    %c0_i32 = arith.constant 0 : i32
    %c0_i32_0 = arith.constant 0 : i32
    %c0_i32_1 = arith.constant 0 : i32
    return %c0_i32, %c0_i32_0 : i32, i32
  }
  func.func @transform_5(%arg0: i32) -> (i32, i32) {
    %c0_i32 = arith.constant 0 : i32
    %c0_i32_0 = arith.constant 0 : i32
    %c0_i32_1 = arith.constant 0 : i32
    return %c0_i32, %c0_i32_0 : i32, i32
  }
  func.func @transform_6(%arg0: i32) -> (i32, i32) {
    %c0_i32 = arith.constant 0 : i32
    %c0_i32_0 = arith.constant 0 : i32
    %c0_i32_1 = arith.constant 0 : i32
    return %c0_i32, %c0_i32_0 : i32, i32
  }
  func.func @transform_7(%arg0: i32) -> (i32, i32) {
    %c0_i32 = arith.constant 0 : i32
    %c0_i32_0 = arith.constant 0 : i32
    return %arg0, %c0_i32 : i32, i32
  }
}

</mosaic_0001>

<bundles_post_ra>
// kernel: tpu_custom_call.1
= control target key start
LH: loop header
LB: loop body
LE: loop exit
PB: predicated region body
PF: predicated region fallthrough
CT: control target
= control target key end

     0   :  { %12 = vsyncpa [#allocation3], 0  ;;  %s852_s0 = inlined_call_operand.hbm [shape: f32[8,32], index: 0, kind: input, shape index: {}]   ;;  %s853_s1 = inlined_call_operand.hbm [shape: f32[32,128], index: 1, kind: input, shape index: {}]   ;;  %s854_s2 = inlined_call_operand.vmem [shape: f32[1,128], index: 2, kind: input, shape index: {}]   ;;  %s855_s3 = inlined_call_operand.hbm [shape: f32[128,128], index: 3, kind: input, shape index: {}]   ;;  %s856_s4 = inlined_call_operand.vmem [shape: f32[1,128], index: 4, kind: input, shape index: {}]   ;;  %s857_s5 = inlined_call_operand.hbm [shape: f32[128,128], index: 5, kind: input, shape index: {}]   ;;  %s858_s6 = inlined_call_operand.vmem [shape: f32[1,128], index: 6, kind: input, shape index: {}]   ;;  %s859_s7 = inlined_call_operand.hbm [shape: f32[8,128], index: 7, kind: output, shape index: {}]  }
   0x1   :  { %13 = vsyncpa [#allocation6], 0 }
   0x2   :  { %14 = vsyncpa [#allocation9], 0 }
   0x3   :  { %15 = vsyncpa [#allocation4], 0  ;;  %s703_s24 = smov [#allocation5]   ;;  %s585_s28 = scalar_lea.hbm %s853_s1, 512 }
   0x4   :  { %s31_s25 = sshll.u32 %s703_s24, 4  ;;  %p586_p0 = scmp.ne.s32.totalorder %s853_s1, %s585_s28  ;;  %s32_s25 = int_to_ptr.vmem [resolvable:$true] %s31_s25 }
   0x5   :  { %p589_p1 = scmp.lt.u32.totalorder %s585_s28, %s853_s1 }
   0x7   :  { %p591_p2 = pnand %p589_p1, %p586_p0 }
   0x9   :  { %594 = shalt.err (!%p591_p2)
}
   0xa   :  { %s595_s10 = scalar_lea.vmem %s32_s25, 512  ;;  %p600_p4 = scmp.lt.s32.totalorder %s32_s25, %s32_s25 }
   0xb   :  { %p596_p3 = scmp.ne.s32.totalorder %s32_s25, %s595_s10  ;;  %p601_p5 = scmp.lt.s32.totalorder %s595_s10, %s595_s10 }
   0xd   :  { %p602_p6 = por %p601_p5, %p600_p4 }
   0xf   :  { %p603_p7 = pnand %p602_p6, %p596_p3 }
  0x11   :  { %606 = shalt.err (!%p603_p7)
}
  0x12   :  { %s704_s11 = smov 128   ;;  %s705_s12 = smov 8  }
  0x13   :  { %37 = dma.hbm_to_vmem [thread:$0]  %s853_s1, 512, %s32_s25, [#allocation6], %s704_s11, %s704_s11, %s705_s12  }
  0x14   :  { %s706_s15 = smov [#allocation2]   ;;  %s707_s17 = smov [#allocation7]  }
  0x15   :  { %s22_s16 = sshll.u32 %s706_s15, 4  ;;  %s45_s18 = sshll.u32 %s707_s17, 4  ;;  %s23_s16 = int_to_ptr.vmem [resolvable:$true] %s22_s16  ;;  %s46_s18 = int_to_ptr.vmem [resolvable:$true] %s45_s18 }
  0x16   :  { %s607_s21 = scalar_lea.hbm %s852_s0, 128 }
  0x17   :  { %p608_p8 = scmp.ne.s32.totalorder %s852_s0, %s607_s21  ;;  %p611_p9 = scmp.lt.u32.totalorder %s607_s21, %s852_s0 }
  0x19   :  { %p613_p10 = pnand %p611_p9, %p608_p8 }
  0x1b   :  { %616 = shalt.err (!%p613_p10)
}
  0x1c   :  { %s617_s1 = scalar_lea.vmem %s23_s16, 128  ;;  %p622_p12 = scmp.lt.s32.totalorder %s23_s16, %s23_s16 }
  0x1d   :  { %p618_p11 = scmp.ne.s32.totalorder %s23_s16, %s617_s1  ;;  %p623_p13 = scmp.lt.s32.totalorder %s617_s1, %s617_s1 }
  0x1f   :  { %p624_p0 = por %p623_p13, %p622_p12 }
  0x21   :  { %p625_p1 = pnand %p624_p0, %p618_p11 }
  0x23   :  { %628 = shalt.err (!%p625_p1)
}
  0x24   :  { %25 = dma.hbm_to_vmem [thread:$0]  %s852_s0, 128, %s23_s16, [#allocation3]  }
  0x25   :  { %s629_s30 = scalar_lea.hbm %s855_s3, 2048 }
  0x26   :  { %p630_p2 = scmp.ne.s32.totalorder %s855_s3, %s629_s30  ;;  %p633_p3 = scmp.lt.u32.totalorder %s629_s30, %s855_s3 }
  0x28   :  { %p635_p4 = pnand %p633_p3, %p630_p2 }
  0x2a   :  { %638 = shalt.err (!%p635_p4)
}
  0x2b   :  { %s639_s14 = scalar_lea.vmem %s46_s18, 2048  ;;  %p644_p6 = scmp.lt.s32.totalorder %s46_s18, %s46_s18 }
  0x2c   :  { %p640_p5 = scmp.ne.s32.totalorder %s46_s18, %s639_s14  ;;  %p645_p7 = scmp.lt.s32.totalorder %s639_s14, %s639_s14 }
  0x2e   :  { %p646_p8 = por %p645_p7, %p644_p6 }
  0x30   :  { %p647_p9 = pnand %p646_p8, %p640_p5 }
  0x32   :  { %650 = shalt.err (!%p647_p9)
}
  0x33   :  { %51 = dma.hbm_to_vmem [thread:$0]  %s855_s3, 2048, %s46_s18, [#allocation6], %s704_s11, %s704_s11, %s705_s12  }
  0x34   :  { %s708_s16 = smov [#allocation8]   ;;  %s651_s21 = scalar_lea.hbm %s857_s5, 2048 }
  0x35   :  { %s59_s17 = sshll.u32 %s708_s16, 4  ;;  %p652_p10 = scmp.ne.s32.totalorder %s857_s5, %s651_s21  ;;  %s60_s17 = int_to_ptr.vmem [resolvable:$true] %s59_s17 }
  0x36   :  { %p655_p11 = scmp.lt.u32.totalorder %s651_s21, %s857_s5 }
  0x38   :  { %p657_p12 = pnand %p655_p11, %p652_p10 }
  0x3a   :  { %660 = shalt.err (!%p657_p12)
}
  0x3b   :  { %s661_s1 = scalar_lea.vmem %s60_s17, 2048  ;;  %p666_p0 = scmp.lt.s32.totalorder %s60_s17, %s60_s17 }
  0x3c   :  { %p662_p13 = scmp.ne.s32.totalorder %s60_s17, %s661_s1  ;;  %p667_p1 = scmp.lt.s32.totalorder %s661_s1, %s661_s1 }
  0x3e   :  { %p668_p2 = por %p667_p1, %p666_p0 }
  0x40   :  { %p669_p3 = pnand %p668_p2, %p662_p13 }
  0x42   :  { %672 = shalt.err (!%p669_p3)
}
  0x43   :  { %65 = dma.hbm_to_vmem [thread:$0]  %s857_s5, 2048, %s60_s17, [#allocation9], %s704_s11, %s704_s11, %s705_s12  }
  0x44   :  { %695 = dma.done.wait [#allocation3], 128  }
  0x45   :  { %696 = vsyncadd [#allocation3], 4294967168 }
  0x46   :  { %697 = dma.done.wait [#allocation6], 2560  }
  0x47   :  { %698 = vsyncadd [#allocation6], 4294964736 }
  0x48   :  { %699 = dma.done.wait [#allocation9], 2048  }
  0x49   :  { %700 = vsyncadd [#allocation9], 4294965248  ;;  %v709_v0 = vmov 0.0|0.0   ;;  %vm710_vm0 = vmmov 0   ;;  %v711_v1 = vmov 0.0   ;;  %v81_v2 = vld [vmem:[#allocation5] sm:$0xff] }
  0x4a   :  { %513 = vmatprep.subr.bf16.mxu0 %v709_v0  ;;  %440 = vmatprep.mubr.msk.f32.mxu0 %vm710_vm0, %v711_v1  ;;  %v82_v3 = vld [vmem:[#allocation5 + $0x8] sm:$0xff]  ;;  %v83_v4 = vld [vmem:[#allocation5 + $0x10] sm:$0xff]  ;;  %v84_v6 = vld [vmem:[#allocation5 + $0x18] sm:$0xff]  ;;  %vm92_vm1 = vcmask 261120  }
  0x4b   :  { %519 = vmatprep.subr.bf16.mxu1 %v709_v0  ;;  %475 = vmatprep.mubr.msk.f32.mxu1 %vm710_vm0, %v711_v1  ;;  %v514_v5 = vpack.c.bf16 %v82_v3, %v81_v2  ;;  %v167_v7 = vld [vmem:[#allocation7] sm:$0xff]  ;;  %v168_v8 = vld [vmem:[#allocation7 + $0x8] sm:$0xff]  ;;  %v169_v9 = vld [vmem:[#allocation7 + $0x10] sm:$0xff]  ;;  %v517_v11 = vpack.c.bf16 %v84_v6, %v83_v4  ;;  %v354_v4 = vlaneseq }
  0x4c   :  { %v170_v10 = vld [vmem:[#allocation7 + $0x18] sm:$0xff]  ;;  %v520_v12 = vpack.c.bf16 %v168_v8, %v167_v7  ;;  %v171_v14 = vld [vmem:[#allocation7 + $0x20] sm:$0xff]  ;;  %v172_v15 = vld [vmem:[#allocation7 + $0x28] sm:$0xff] }
  0x4d   :  { %515 = vmatpush3.bf16.msra.mxu0 %v514_v5  ;;  %v523_v13 = vpack.c.bf16 %v170_v10, %v169_v9  ;;  %v80_v16 = vld [vmem:[#allocation2] sm:$0xff]  ;;  %v526_v17 = vpack.c.bf16 %v172_v15, %v171_v14  ;;  %v173_v18 = vld [vmem:[#allocation7 + $0x30] sm:$0xff]  ;;  %v175_v21 = vld [vmem:[#allocation7 + $0x40] sm:$0xff]  ;;  %v355_v5 = vand.u32 127, %v354_v4 }
  0x4e   :  { %516 = vmatprep.subr.bf16.mxu0 %v709_v0  ;;  %521 = vmatpush3.bf16.msra.mxu1 %v520_v12  ;;  %v174_v19 = vld [vmem:[#allocation7 + $0x38] sm:$0xff]  ;;  %v176_v22 = vld [vmem:[#allocation7 + $0x48] sm:$0xff]  ;;  %v177_v24 = vld [vmem:[#allocation7 + $0x50] sm:$0xff] }
  0x4f   :  { %522 = vmatprep.subr.bf16.mxu1 %v709_v0  ;;  %v529_v20 = vpack.c.bf16 %v174_v19, %v173_v18  ;;  %v532_v23 = vpack.c.bf16 %v176_v22, %v175_v21  ;;  %v178_v25 = vld [vmem:[#allocation7 + $0x58] sm:$0xff]  ;;  %v179_v27 = vld [vmem:[#allocation7 + $0x60] sm:$0xff]  ;;  %v180_v28 = vld [vmem:[#allocation7 + $0x68] sm:$0xff]  ;;  %vm356_vm2 = vcmp.lt.s32.totalorder %v355_v5, 4  ;;  %vm357_vm3 = vcmp.eq.s32.totalorder %v355_v5, 4 }
  0x50   :  { %v535_v26 = vpack.c.bf16 %v178_v25, %v177_v24  ;;  %v538_v29 = vpack.c.bf16 %v180_v28, %v179_v27  ;;  %v181_v30 = vld [vmem:[#allocation7 + $0x70] sm:$0xff]  ;;  %v182_v31 = vld [vmem:[#allocation7 + $0x78] sm:$0xff]  ;;  %v261_v33 = vld [vmem:[#allocation8] sm:$0xff] }
  0x51   :  { %518 = vmatpush3.bf16.msra.mxu0 %v517_v11  ;;  %v541_v32 = vpack.c.bf16 %v182_v31, %v181_v30  ;;  %v262_v34 = vld [vmem:[#allocation8 + $0x8] sm:$0xff]  ;;  %v263_v35 = vld [vmem:[#allocation8 + $0x10] sm:$0xff]  ;;  %v264_v37 = vld [vmem:[#allocation8 + $0x18] sm:$0xff] }
  0x52   :  { %543 = vmatprep.subr.bf16.mxu0 %v709_v0  ;;  %524 = vmatpush3.bf16.msra.mxu1 %v523_v13  ;;  %v544_v36 = vpack.c.bf16 %v262_v34, %v261_v33  ;;  %v547_v38 = vpack.c.bf16 %v264_v37, %v263_v35  ;;  %v265_v39 = vld [vmem:[#allocation8 + $0x20] sm:$0xff]  ;;  %v266_v40 = vld [vmem:[#allocation8 + $0x28] sm:$0xff]  ;;  %v267_v42 = vld [vmem:[#allocation8 + $0x30] sm:$0xff] }
  0x53   :  { %525 = vmatprep.subr.bf16.mxu1 %v709_v0  ;;  %v550_v41 = vpack.c.bf16 %v266_v40, %v265_v39  ;;  %v268_v43 = vld [vmem:[#allocation8 + $0x38] sm:$0xff]  ;;  %v269_v45 = vld [vmem:[#allocation8 + $0x40] sm:$0xff]  ;;  %v270_v46 = vld [vmem:[#allocation8 + $0x48] sm:$0xff] }
  0x54   :  { %441 = vmatmul.mubr.msk.f32.vlgmr.msra.gmra.mrb[0].mxu0 %vm92_vm1, %v80_v16  ;;  %v553_v44 = vpack.c.bf16 %v268_v43, %v267_v42  ;;  %v556_v47 = vpack.c.bf16 %v270_v46, %v269_v45  ;;  %v389_v48 = vld [vmem:[%s854_s2] ss:$0 sm:$0xff]  ;;  %v271_v53 = vld [vmem:[#allocation8 + $0x50] sm:$0xff]  ;;  %v273_v56 = vld [vmem:[#allocation8 + $0x60] sm:$0xff] }
  0x55   :  { %510 = vmatprep.mubr.msk.f32.mxu0 %vm710_vm0, %v711_v1  ;;  %545 = vmatpush3.bf16.msra.mxu0 %v544_v36  ;;  %v272_v54 = vld [vmem:[#allocation8 + $0x58] sm:$0xff]  ;;  %v274_v57 = vld [vmem:[#allocation8 + $0x68] sm:$0xff]  ;;  %v275_v59 = vld [vmem:[#allocation8 + $0x70] sm:$0xff] }
  0x56   :  { %527 = vmatpush3.bf16.msra.mxu1 %v526_v17  ;;  %546 = vmatprep.subr.bf16.mxu0 %v709_v0  ;;  %v559_v55 = vpack.c.bf16 %v272_v54, %v271_v53  ;;  %v562_v58 = vpack.c.bf16 %v274_v57, %v273_v56  ;;  %v276_v60 = vld [vmem:[#allocation8 + $0x78] sm:$0xff] }
  0x57   :  { %528 = vmatprep.subr.bf16.mxu1 %v709_v0  ;;  %v565_v61 = vpack.c.bf16 %v276_v60, %v275_v59  ;;  %v391_v62 = vld [vmem:[%s856_s4] ss:$0 sm:$0xff]  ;;  %s712_s4 = smov [#allocation10]  }
  0x58   :  { %v392_v6 = vld [vmem:[%s858_s6] ss:$0 sm:$0xff]  ;;  %s378_s28 = sshll.u32 %s712_s4, 4  ;;  %s379_s28 = int_to_ptr.vmem [resolvable:$true] %s378_s28 }
  0x59   :  { %548 = vmatpush3.bf16.msra.mxu0 %v547_v38  ;;  %s673_s6 = scalar_lea.vmem %s379_s28, 128  ;;  %p678_p5 = scmp.lt.s32.totalorder %s379_s28, %s379_s28 }
  0x5a   :  { %530 = vmatpush3.bf16.msra.mxu1 %v529_v20  ;;  %549 = vmatprep.subr.bf16.mxu0 %v709_v0  ;;  %p674_p4 = scmp.ne.s32.totalorder %s379_s28, %s673_s6  ;;  %p679_p6 = scmp.lt.s32.totalorder %s673_s6, %s673_s6 }
  0x5b   :  { %531 = vmatprep.subr.bf16.mxu1 %v709_v0 }
  0x5c   :  { %p680_p7 = por %p679_p6, %p678_p5 }
  0x5d   :  { %551 = vmatpush3.bf16.msra.mxu0 %v550_v41 }
  0x5e   :  { %533 = vmatpush3.bf16.msra.mxu1 %v532_v23  ;;  %552 = vmatprep.subr.bf16.mxu0 %v709_v0  ;;  %p681_p8 = pnand %p680_p7, %p674_p4 }
  0x5f   :  { %534 = vmatprep.subr.bf16.mxu1 %v709_v0 }
  0x61   :  { %554 = vmatpush3.bf16.msra.mxu0 %v553_v44 }
  0x62   :  { %536 = vmatpush3.bf16.msra.mxu1 %v535_v26  ;;  %555 = vmatprep.subr.bf16.mxu0 %v709_v0 }
  0x63   :  { %537 = vmatprep.subr.bf16.mxu1 %v709_v0 }
  0x65   :  { %557 = vmatpush3.bf16.msra.mxu0 %v556_v47 }
  0x66   :  { %539 = vmatpush3.bf16.msra.mxu1 %v538_v29  ;;  %558 = vmatprep.subr.bf16.mxu0 %v709_v0 }
  0x67   :  { %540 = vmatprep.subr.bf16.mxu1 %v709_v0 }
  0x69   :  { %560 = vmatpush3.bf16.msra.mxu0 %v559_v55 }
  0x6a   :  { %542 = vmatpush3.bf16.msra.mxu1 %v541_v32  ;;  %561 = vmatprep.subr.bf16.mxu0 %v709_v0 }
  0x6d   :  { %563 = vmatpush3.bf16.msra.mxu0 %v562_v58 }
  0x6e   :  { %564 = vmatprep.subr.bf16.mxu0 %v709_v0 }
  0x71   :  { %566 = vmatpush3.bf16.msra.mxu0 %v565_v61 }
 0x127   :  { %v162_v49 = vpop.f32.mrb[0].mxu0 }
 0x128   :  { %v163_v50 = vadd.f32 %v389_v48, %v162_v49  ;;  %v442_v51 = vpop.f32.mrb[1].mxu0 }
 0x12a   :  { %577 = vtanh.f32 %v163_v50 }
 0x134   :  { %v578_v52 = vpop.eup %577 }
 0x135   :  { %476 = vmatmul.mubr.f32.vlgmr.msra.gmra.mrb[0].mxu1 %v578_v52 }
 0x208   :  { %v256_v63 = vpop.f32.mrb[0].mxu1 }
 0x209   :  { %v257_v1 = vadd.f32 %v391_v62, %v256_v63  ;;  %v477_v2 = vpop.f32.mrb[1].mxu1 }
 0x20b   :  { %579 = vtanh.f32 %v257_v1 }
 0x215   :  { %v580_v3 = vpop.eup %579 }
 0x216   :  { %511 = vmatmul.mubr.f32.vlgmr.msra.gmra.mrb[2].mxu0 %v580_v3 }
 0x2e9   :  { %v350_v7 = vpop.f32.mrb[2].mxu0 }
 0x2ea   :  { %v351_v0 = vadd.f32 %v392_v6, %v350_v7  ;;  %v512_v8 = vpop.f32.mrb[3].mxu0 }
 0x2ec   :  { %v358_v9 = vsel %vm356_vm2, %v351_v0, -inf  ;;  %v369_v18 = vsel %vm357_vm3, %v351_v0, 0.0 }
 0x2ed   :  { %359 = vmax.xlane.f32.xlu0 %v358_v9 }
 0x37a   :  { %v360_v10 = vpop.xlane.xlu0 %359 }
 0x37b   :  { %v361_v11 = vsub.f32 %v351_v0, %v360_v10 }
 0x37d   :  { %v362_v12 = vmul.f32 1.442695, %v361_v11 }
 0x37f   :  { %581 = vpow2.f32 %v362_v12 }
 0x389   :  { %v582_v13 = vpop.eup %581 }
 0x38a   :  { %v364_v14 = vsel %vm356_vm2, %v582_v13, 0.0 }
 0x38b   :  { %365 = vadd.xlane.f32.xlu0 %v364_v14 }
 0x418   :  { %v366_v15 = vpop.xlane.xlu0 %365 }
 0x419   :  { %583 = vrcp.f32 %v366_v15 }
 0x423   :  { %v584_v16 = vpop.eup %583 }
 0x424   :  { %v368_v17 = vmul.f32 %v584_v16, %v364_v14 }
 0x426   :  { %v370_v19 = vadd.f32 %v369_v18, %v368_v17 }
 0x428   :  { %371 = vst [vmem:[#allocation10] sm:$0xff] %v370_v19 }
 0x429   :  { %684 = shalt.err (!%p681_p8)
}
 0x42a   :  { %s685_s8 = scalar_lea.hbm %s859_s7, 128 }
 0x42b   :  { %p686_p9 = scmp.ne.s32.totalorder %s859_s7, %s685_s8  ;;  %p689_p10 = scmp.lt.u32.totalorder %s685_s8, %s859_s7 }
 0x42d   :  { %p691_p11 = pnand %p689_p10, %p686_p9 }
 0x42f   :  { %694 = shalt.err (!%p691_p11)
}
 0x430   :  { %381 = dma.vmem_to_hbm [thread:$0]  %s379_s28, 128, %s859_s7, [#allocation4]  }
 0x431   :  { %701 = dma.done.wait [#allocation4], 128  }
 0x432   :  { %702 = vsyncadd [#allocation4], 4294967168 }
 0x433   :  { %385 = vsyncpa [#allocation3], 1 }
 0x434   :  { %386 = vsyncpa [#allocation6], 1 }
 0x435   :  { %387 = vsyncpa [#allocation9], 1 }
 0x436   :  { %388 = vsyncpa [#allocation4], 1 }

</bundles_post_ra>
